<compile_context>
chip_gen: v6e
topology: v6e:2x2x1
jax: 0.10.0
libtpu: 0.0.40
codegen_flags: <defaults>
</compile_context>

<pallas_src>
import math

import jax
import jax.numpy as jnp
from jax import lax
from jax.experimental import pallas as pl
from jax.experimental.pallas import tpu as pltpu

LANE = 128


# ----------------------------- kernel 1: supports -----------------------------
def supports_kernel(emb_ref, out_ref):
    # emb_ref: (N, E) float32
    # out_ref: (K-1, N, N) compute dtype, holding [T1=S, T2, ..., T_{K-1}].
    km1, n, _ = out_ref.shape
    e = emb_ref[...].astype(jnp.float32)
    a = jnp.dot(e, e.T, preferred_element_type=jnp.float32)          # (N, N)
    a = jnp.maximum(a, 0.0)                                          # relu
    a = a - jnp.max(a, axis=-1, keepdims=True)                       # softmax(dim=1)
    ea = jnp.exp(a)
    s = ea / jnp.sum(ea, axis=-1, keepdims=True)                     # exact (one-time)

    rows = lax.broadcasted_iota(jnp.int32, (n, n), 0)
    cols = lax.broadcasted_iota(jnp.int32, (n, n), 1)
    eye = (rows == cols).astype(jnp.float32)

    sup = [eye, s]                                                   # T0, T1
    for _ in range(2, km1 + 1):                                      # T2 .. T_{K-1}
        sup.append(
            2.0 * jnp.dot(s, sup[-1], preferred_element_type=jnp.float32)
            - sup[-2]
        )
    for k in range(km1):
        out_ref[k] = sup[k + 1].astype(out_ref.dtype)


def build_supports(node_embeddings, cheb_k, out_dtype):
    n = node_embeddings.shape[0]
    return pl.pallas_call(
        supports_kernel,
        out_shape=jax.ShapeDtypeStruct((cheb_k - 1, n, n), out_dtype),
    )(node_embeddings.astype(jnp.float32))


# ----------------------------- kernel 2: graph conv ---------------------------
def gconv_kernel(x_ref, sup_ref, w_ref, b_ref, o_ref):
    # x_ref:   (BB, N, Di)   compute dtype      (batch block)
    # sup_ref: (K-1, N, N)   compute dtype      (resident; T1..T_{K-1})
    # w_ref:   (K, Di, Dp)   compute dtype      (Dp = dim_out padded to 128*)
    # b_ref:   (1, Dp)       float32
    # o_ref:   (BB, N, Dp)   float32            (lane-dense store)
    bb = x_ref.shape[0]
    km1 = sup_ref.shape[0]
    cdt = sup_ref.dtype
    bias = b_ref[...].astype(jnp.float32)                            # (1, Dp)

    for b in range(bb):                                              # static unroll
        xb = x_ref[b]                                                # (N, Di)
        # T0 = I: its contribution is simply X @ W_0 (skip the NxN matmul).
        acc = jnp.dot(xb, w_ref[0], preferred_element_type=jnp.float32)
        for k in range(km1):
            # dense projection first: T_k @ (X W_k)  ==  (T_k X) W_k
            z = jnp.dot(xb, w_ref[k + 1], preferred_element_type=jnp.float32)
            acc = acc + jnp.dot(sup_ref[k], z.astype(cdt),
                                preferred_element_type=jnp.float32)
        o_ref[b] = (acc + bias).astype(o_ref.dtype)


# ----------------------------- wrapper ----------------------------------------
def _pick_batch_block(b, n, target_rows=256):
    # enough rows per grid step to feed the MXU, while dividing batch evenly
    bb = max(1, min(b, target_rows // max(n, 1)))
    while b % bb:
        bb -= 1
    return bb


def agcn_forward(x, node_embeddings, weights, bias, cheb_k,
                 compute_dtype=jnp.bfloat16):
    """Pallas TPU forward of AGCN.  x: (B, N, Di) -> (B, N, Do) float32."""
    b, n, di = x.shape
    do = weights.shape[-1]
    assert cheb_k >= 2, "AGCN requires cheb_k >= 2 (support set is [I, S, ...])"
    assert weights.shape[0] == cheb_k * di

    # Chebyshev support stack (fp32 math inside, stored in compute dtype).
    supports = build_supports(node_embeddings, cheb_k, compute_dtype)

    # Accumulation-form weights (K*Di, Do) -> (K, Di, Do); pad Do to a lane
    # multiple so the output store is unmasked / lane-dense.
    dp = ((do + LANE - 1) // LANE) * LANE
    w3 = weights.reshape(cheb_k, di, do)
    b2 = bias.reshape(1, do).astype(jnp.float32)
    if dp != do:
        w3 = jnp.pad(w3, ((0, 0), (0, 0), (0, dp - do)))
        b2 = jnp.pad(b2, ((0, 0), (0, dp - do)))
    w3 = w3.astype(compute_dtype)
    xc = x.astype(compute_dtype)

    bb = _pick_batch_block(b, n)

    grid_spec = pltpu.PrefetchScalarGridSpec(
        num_scalar_prefetch=0,
        grid=(b // bb,),
        in_specs=[
            pl.BlockSpec((bb, n, di), lambda i: (i, 0, 0)),            # x block
            pl.BlockSpec((cheb_k - 1, n, n), lambda i: (0, 0, 0)),     # supports
            pl.BlockSpec((cheb_k, di, dp), lambda i: (0, 0, 0)),       # weights
            pl.BlockSpec((1, dp), lambda i: (0, 0)),                   # bias
        ],
        out_specs=pl.BlockSpec((bb, n, dp), lambda i: (i, 0, 0)),
    )

    out = pl.pallas_call(
        gconv_kernel,
        out_shape=jax.ShapeDtypeStruct((b, n, dp), jnp.float32),
        grid_spec=grid_spec,
        compiler_params=pltpu.CompilerParams(
            dimension_semantics=("parallel",)),
    )(xc, supports, w3, b2)

    return out[..., :do]


# ----------------------------- reference & init --------------------------------
def agcn_reference(x, node_embeddings, weights, bias, cheb_k):
    e = node_embeddings
    s = jax.nn.softmax(jax.nn.relu(e @ e.T), axis=1)
    n = e.shape[0]
    sup = [jnp.eye(n, dtype=jnp.float32), s]
    for _ in range(2, cheb_k):
        sup.append(2.0 * (s @ sup[-1]) - sup[-2])
    sup = sup[:cheb_k]
    x_g = jnp.concatenate(
        [jnp.einsum('nm,bmc->bnc', sk, x) for sk in sup], axis=-1)
    return jnp.einsum('bni,io->bno', x_g, weights) + bias


def xavier_normal(key, shape):
    fan_in, fan_out = shape
    std = math.sqrt(2.0 / (fan_in + fan_out))
    return std * jax.random.normal(key, shape, dtype=jnp.float32)


# ----------------------------- main ---------------------------------------------
if __name__ == "__main__":
    B, N, DIM_IN, DIM_OUT, CHEB_K, EMBED_DIM = 2, 16, 4, 32, 3, 8

    key = jax.random.PRNGKey(0)
    kx, ke, kw = jax.random.split(key, 3)
    x = jax.random.normal(kx, (B, N, DIM_IN), dtype=jnp.float32)
    node_embeddings = jax.random.normal(ke, (N, EMBED_DIM), dtype=jnp.float32)
    weights = xavier_normal(kw, (CHEB_K * DIM_IN, DIM_OUT))
    bias = jnp.zeros((DIM_OUT,), jnp.float32)

    out = agcn_forward(x, node_embeddings, weights, bias, CHEB_K)
    out = jax.block_until_ready(out)
    assert out.shape == (B, N, DIM_OUT)
    assert bool(jnp.all(jnp.isfinite(out)))

    # bf16 matmul operands (fp32 accumulation) -> loose tolerance vs fp32 ref.
    ref = agcn_reference(x, node_embeddings, weights, bias, CHEB_K)
    max_err = float(jnp.max(jnp.abs(out - ref)))
    assert bool(jnp.allclose(out, ref, atol=5e-2, rtol=5e-2)), f"max|err|={max_err}"

    print("KERNEL_OK")
</pallas_src>

<mosaic_0001>
module attributes {stable_mosaic.version = 11 : i64} {
  func.func @supports_kernel(%arg0: memref<16x8xf32, #tpu.memory_space<vmem>>, %arg1: memref<2x16x16xbf16, #tpu.memory_space<vmem>>) attributes {dimension_semantics = [], scalar_prefetch = 0 : i64, scratch_operands = 0 : i64, tpu.core_type = #tpu.core_type<tc>} {
    %c0 = arith.constant 0 : index
    %c0_0 = arith.constant 0 : index
    %0 = vector.load %arg0[%c0, %c0_0] : memref<16x8xf32, #tpu.memory_space<vmem>>, vector<16x8xf32>
    %1 = tpu.transpose %0, [1, 0] : vector<16x8xf32> -> vector<8x16xf32>
    %cst = arith.constant dense<0.000000e+00> : vector<16x16xf32>
    %2 = tpu.matmul %0, %1, %cst {dimension_numbers = #tpu.dot_dimension_numbers<[1], [0], [0], [1], [0, 0, 1, 1], [], []>} : vector<16x8xf32>, vector<8x16xf32>, vector<16x16xf32> -> vector<16x16xf32>
    %cst_1 = arith.constant 0.000000e+00 : f32
    %3 = vector.broadcast %cst_1 : f32 to vector<16x16xf32>
    %4 = arith.maximumf %2, %3 : vector<16x16xf32>
    %cst_2 = arith.constant dense<0xFF800000> : vector<16xf32>
    %5 = vector.multi_reduction <maximumf>, %4, %cst_2 [1] : vector<16x16xf32> to vector<16xf32>
    %6 = vector.shape_cast %5 : vector<16xf32> to vector<16x1xf32>
    %7 = vector.broadcast %6 : vector<16x1xf32> to vector<16x16xf32>
    %8 = arith.subf %4, %7 : vector<16x16xf32>
    %9 = math.exp %8 : vector<16x16xf32>
    %cst_3 = arith.constant dense<0.000000e+00> : vector<16xf32>
    %10 = vector.multi_reduction <add>, %9, %cst_3 [1] : vector<16x16xf32> to vector<16xf32>
    %11 = vector.shape_cast %10 : vector<16xf32> to vector<16x1xf32>
    %12 = vector.broadcast %11 : vector<16x1xf32> to vector<16x16xf32>
    %13 = arith.divf %9, %12 : vector<16x16xf32>
    %14 = tpu.iota {dimensions = array<i32: 0>} : vector<16x16xi32>
    %15 = tpu.iota {dimensions = array<i32: 1>} : vector<16x16xi32>
    %16 = arith.cmpi eq, %14, %15 : vector<16x16xi32>
    %17 = arith.extui %16 : vector<16x16xi1> to vector<16x16xi32>
    %18 = arith.sitofp %17 : vector<16x16xi32> to vector<16x16xf32>
    %cst_4 = arith.constant dense<0.000000e+00> : vector<16x16xf32>
    %19 = tpu.matmul %13, %13, %cst_4 {dimension_numbers = #tpu.dot_dimension_numbers<[1], [0], [0], [1], [0, 0, 1, 1], [], []>} : vector<16x16xf32>, vector<16x16xf32>, vector<16x16xf32> -> vector<16x16xf32>
    %cst_5 = arith.constant 2.000000e+00 : f32
    %20 = vector.broadcast %cst_5 : f32 to vector<16x16xf32>
    %21 = arith.mulf %20, %19 : vector<16x16xf32>
    %22 = arith.subf %21, %18 : vector<16x16xf32>
    %23 = arith.truncf %13 : vector<16x16xf32> to vector<16x16xbf16>
    %c0_6 = arith.constant 0 : index
    %c0_7 = arith.constant 0 : index
    %c0_8 = arith.constant 0 : index
    %24 = vector.load %arg1[%c0_6, %c0_7, %c0_8] : memref<2x16x16xbf16, #tpu.memory_space<vmem>>, vector<1x16x16xbf16>
    %25 = vector.shape_cast %24 : vector<1x16x16xbf16> to vector<16x16xbf16>
    %26 = vector.shape_cast %23 : vector<16x16xbf16> to vector<1x16x16xbf16>
    tpu.vector_store %arg1[%c0_6, %c0_7, %c0_8], %26 {strides = array<i32>} : memref<2x16x16xbf16, #tpu.memory_space<vmem>>, vector<1x16x16xbf16>,
    %27 = arith.truncf %22 : vector<16x16xf32> to vector<16x16xbf16>
    %c1 = arith.constant 1 : index
    %c0_9 = arith.constant 0 : index
    %c0_10 = arith.constant 0 : index
    %28 = vector.load %arg1[%c1, %c0_9, %c0_10] : memref<2x16x16xbf16, #tpu.memory_space<vmem>>, vector<1x16x16xbf16>
    %29 = vector.shape_cast %28 : vector<1x16x16xbf16> to vector<16x16xbf16>
    %30 = vector.shape_cast %27 : vector<16x16xbf16> to vector<1x16x16xbf16>
    tpu.vector_store %arg1[%c1, %c0_9, %c0_10], %30 {strides = array<i32>} : memref<2x16x16xbf16, #tpu.memory_space<vmem>>, vector<1x16x16xbf16>,
    return
  }
}

</mosaic_0001>

<bundles_post_ra>
// kernel: tpu_custom_call.1
= control target key start
LH: loop header
LB: loop body
LE: loop exit
PB: predicated region body
PF: predicated region fallthrough
CT: control target
= control target key end

     0   :  { %vm11_vm0 = vcmask 64512   ;;  %s357_s0 = inlined_call_operand.vmem [shape: f32[16,8], index: 0, kind: input, shape index: {}]   ;;  %s358_s1 = inlined_call_operand.hbm [shape: bf16[2,16,16], index: 1, kind: output, shape index: {}]  }
   0x1   :  { %v10_v0 = vld [vmem:[%s357_s0 + $0x8] sm:$0xff]  ;;  %v9_v1 = vld [vmem:[%s357_s0] sm:$0xff] }
   0x2   :  { %6 = vsyncpa [#allocation3], 0  ;;  %276 = vmatprep.subr.msk.mxu0 %vm11_vm0, %v10_v0  ;;  %280 = vmatprep.mubr.msk.f32.mxu0 %vm11_vm0, %v9_v1  ;;  %vm95_vm1 = vcmask 130048   ;;  %vm222_vm2 = vcmask 125952   ;;  %v118_v26 = vlaneseq  ;;  %v324_v30 = vmov 0.0   ;;  %s325_s0 = smov [#allocation2]  }
   0x3   :  { %277 = vmatpush3.xpose.msk.msra.mxu0 %vm11_vm0, %v10_v0  ;;  %s241_s10 = sshll.u32 %s325_s0, 4  ;;  %s242_s10 = int_to_ptr.vmem [resolvable:$true] %s241_s10 }
   0x4   :  { %278 = vmatprep.subr.msk.mxu0 %vm11_vm0, %v9_v1  ;;  %v119_v27 = vshrl.u32 %v118_v26, 7  ;;  %v122_v29 = vand.u32 127, %v118_v26  ;;  %s302_s11 = scalar_lea.vmem %s242_s10, 256  ;;  %p307_p1 = scmp.lt.s32.totalorder %s242_s10, %s242_s10 }
   0x5   :  { %p303_p0 = scmp.ne.s32.totalorder %s242_s10, %s302_s11  ;;  %p308_p2 = scmp.lt.s32.totalorder %s302_s11, %s302_s11 }
   0x6   :  { %v120_v28 = vadd.s32 8, %v119_v27  ;;  %vm123_vm4 = vcmp.eq.s32.totalorder %v119_v27, %v122_v29 }
   0x7   :  { %279 = vmatpush3.xpose.msk.msra.mxu0 %vm11_vm0, %v9_v1  ;;  %v256_v34 = vsel %vm123_vm4, 1.0, %v324_v30  ;;  %p309_p3 = por %p308_p2, %p307_p1 }
   0x8   :  { %vm124_vm3 = vcmp.eq.s32.totalorder %v120_v28, %v122_v29 }
   0x9   :  { %v257_v31 = vsel %vm124_vm3, 1.0, %v324_v30  ;;  %p310_p4 = pnand %p309_p3, %p303_p0 }
   0xa   :  { %281 = vmatmul.mubr.msk.f32.vlgmr.msra.gmra.mxu0 %vm11_vm0, %v10_v0 }
  0xca   :  { %v282_v2 = vpop.f32.mrf.mxu0 }
  0xcb   :  { %v94_v3 = vmax.f32 %v282_v2, 0.0 }
  0xcc   :  { %v84_v4 = vpop.f32.mrf.mxu0 }
  0xcd   :  { %v93_v5 = vmax.f32 %v84_v4, 0.0  ;;  %v99_v6 = vsel %vm95_vm1, %v94_v3, -inf }
  0xce   :  { %100 = vmax.xlane.f32.xlu0 %v99_v6 }
  0xcf   :  { %v96_v7 = vsel %vm95_vm1, %v93_v5, -inf }
  0xd2   :  { %97 = vmax.xlane.f32.xlu0 %v96_v7 }
 0x157   :  { %v101_v8 = vpop.xlane.xlu0 %100 }
 0x158   :  { %v103_v9 = vsub.f32 %v94_v3, %v101_v8 }
 0x15a   :  { %v106_v10 = vmul.f32 1.442695, %v103_v9 }
 0x15b   :  { %v98_v11 = vpop.xlane.xlu0 %97 }
 0x15c   :  { %294 = vpow2.f32 %v106_v10  ;;  %v102_v12 = vsub.f32 %v93_v5, %v98_v11 }
 0x15e   :  { %v104_v13 = vmul.f32 1.442695, %v102_v12 }
 0x160   :  { %296 = vpow2.f32 %v104_v13 }
 0x169   :  { %v295_v14 = vpop.eup %294 }
 0x16a   :  { %v111_v15 = vsel %vm95_vm1, %v295_v14, 0.0 }
 0x16b   :  { %112 = vadd.xlane.f32.xlu1 %v111_v15 }
 0x16d   :  { %v297_v16 = vpop.eup %296 }
 0x16e   :  { %v108_v17 = vsel %vm95_vm1, %v297_v16, 0.0 }
 0x16f   :  { %109 = vadd.xlane.f32.xlu1 %v108_v17 }
 0x1f4   :  { %v113_v18 = vpop.xlane.xlu1 %112 }
 0x1f5   :  { %298 = vrcp.f32 %v113_v18 }
 0x1f8   :  { %v110_v19 = vpop.xlane.xlu1 %109 }
 0x1f9   :  { %300 = vrcp.f32 %v110_v19 }
 0x202   :  { %v299_v20 = vpop.eup %298 }
 0x203   :  { %v117_v21 = vmul.f32 %v299_v20, %v295_v14 }
 0x205   :  { %283 = vmatprep.subr.mxu1 %v117_v21  ;;  %v265_v22 = vpack.c.bf16 %v117_v21, %v117_v21 }
 0x206   :  { %v301_v23 = vpop.eup %300  ;;  %284 = vmatpush3.msra.mxu1 %v117_v21 }
 0x207   :  { %v115_v24 = vmul.f32 %v301_v23, %v297_v16  ;;  %224 = vst.msk [vmem:[#allocation2 + $0x4] sm:$0xf] %vm222_vm2, %v265_v22 }
 0x209   :  { %285 = vmatprep.subr.mxu1 %v115_v24  ;;  %287 = vmatprep.mubr.msk.f32.mxu1 %vm95_vm1, %v115_v24  ;;  %v264_v25 = vpack.c.bf16 %v115_v24, %v115_v24 }
 0x20a   :  { %286 = vmatpush3.msra.mxu1 %v115_v24 }
 0x20b   :  { %288 = vmatmul.mubr.msk.f32.vlgmr.msra.gmra.mxu1 %vm95_vm1, %v117_v21  ;;  %223 = vst.msk [vmem:[#allocation2] sm:$0xf] %vm222_vm2, %v264_v25 }
 0x2cb   :  { %v289_v32 = vpop.f32.mrf.mxu1 }
 0x2cc   :  { %v211_v33 = vmul.f32 2.0, %v289_v32 }
 0x2cd   :  { %v201_v35 = vpop.f32.mrf.mxu1 }
 0x2ce   :  { %v213_v36 = vsub.f32 %v211_v33, %v257_v31  ;;  %v210_v37 = vmul.f32 2.0, %v201_v35 }
 0x2d0   :  { %v267_v38 = vpack.c.bf16 %v213_v36, %v213_v36  ;;  %v212_v39 = vsub.f32 %v210_v37, %v256_v34 }
 0x2d2   :  { %235 = vst.msk [vmem:[#allocation2 + $0xc] sm:$0xf] %vm222_vm2, %v267_v38  ;;  %v266_v40 = vpack.c.bf16 %v212_v39, %v212_v39 }
 0x2d4   :  { %234 = vst.msk [vmem:[#allocation2 + $0x8] sm:$0xf] %vm222_vm2, %v266_v40 }
 0x2d5   :  { %313 = shalt.err (!%p310_p4)
}
 0x2d6   :  { %s326_s12 = smov 64   ;;  %s327_s13 = smov 4  }
 0x2d7   :  { %247 = dma.vmem_to_hbm [thread:$0]  %s242_s10, 256, %s358_s1, [#allocation3], %s326_s12, %s326_s12, %s327_s13  }
 0x2d8   :  { %322 = dma.done.wait [#allocation3], 256  }
 0x2d9   :  { %323 = vsyncadd [#allocation3], 4294967040 }
 0x2da   :  { %251 = vsyncpa [#allocation3], 1 }

</bundles_post_ra>
